<compile_context>
chip_gen: v7x
topology: tpu7x:2x2x1
jax: 0.10.0
libtpu: 0.0.40
codegen_flags: <defaults>
</compile_context>

<pallas_src>
import functools

import numpy as np
import jax
import jax.numpy as jnp
from jax.experimental import pallas as pl
from jax.experimental.pallas import tpu as pltpu

_MAX_TILE = 32768  # lanes (pairs) per grid step; big tiles amortize ~0.35us/step


def _round_up(x: int, m: int) -> int:
    return ((x + m - 1) // m) * m


def _disp_kernel(cij_ref, box_ref, out_ref, *, periodic: bool):
    """Per-tile displacement + optional PBC wrap + distance.

    cij_ref : VMEM (8, TILE) f32   rows 0-2 = coord_i^T, rows 3-5 = coord_j^T
    box_ref : SMEM (3,)      f32   [Lx, Ly, Lz] (box diagonal)
    out_ref : VMEM (4, TILE) f32   rows 0-2 = r_ij^T, row 3 = d_ij
    """
    r = cij_ref[0:3, :] - cij_ref[3:6, :]          # (3, TILE)

    if periodic:
        # Broadcast per-axis box length across lanes with a sublane iota +
        # selects (pure VPU work, hidden under DMA).
        row = jax.lax.broadcasted_iota(jnp.int32, r.shape, 0)
        box = jnp.where(row == 0, box_ref[0],
                        jnp.where(row == 1, box_ref[1], box_ref[2]))
        # torch.remainder(r + L/2, L) - L/2  ==  r - L * floor((r + L/2) / L)
        # True divide: correct for non-power-of-two L; L == 0 -> NaN (matches
        # torch.remainder(x, 0)).  EUP/divide cost is hidden under DMA.
        r = r - box * jnp.floor((r + 0.5 * box) / box)

    out_ref[0:3, :] = r
    r2 = r * r
    # Explicit row-slice sum avoids a cross-sublane (XLU) reduce.
    out_ref[3:4, :] = jnp.sqrt(r2[0:1, :] + r2[1:2, :] + r2[2:3, :])


class OrthogonalDisplacementFunction:
    """Pallas-TPU port of modelforge's OrthogonalDisplacementFunction (inference)."""

    def __call__(self, coordinate_i, coordinate_j, box_vectors, is_periodic):
        ci = jnp.asarray(coordinate_i, jnp.float32)   # (n_pairs, 3)
        cj = jnp.asarray(coordinate_j, jnp.float32)   # (n_pairs, 3)
        box = jnp.asarray(box_vectors, jnp.float32)   # (3, 3)
        # TODO(synk): is_periodic is consumed as a trace-time Python bool (kernel
        # specialized per value) rather than as a traced tensor like the torch spec.
        periodic = bool(is_periodic)

        n_pairs = ci.shape[0]
        if n_pairs == 0:
            return (jnp.zeros((0, 3), jnp.float32),
                    jnp.zeros((0, 1), jnp.float32))

        # Large lane tile (amortize per-step overhead), but keep >=2 grid
        # steps when possible so the "parallel" axis can shard across v7x's
        # two TensorCores.
        tile = min(_MAX_TILE, _round_up(n_pairs, 128))
        if n_pairs >= 256:
            tile = min(tile, _round_up((n_pairs + 1) // 2, 128))
        p_pad = _round_up(n_pairs, tile)
        grid = (p_pad // tile,)

        # Single 8-sublane, lane-major input slab: (8, P_pad).
        fused = jnp.concatenate([ci, cj], axis=1).T                     # (6, P)
        fused = jnp.pad(fused, ((0, 2), (0, p_pad - n_pairs)))          # (8, P_pad)

        # SMEM scalar params: diagonal of the (orthogonal) box.
        box_diag = jnp.stack([box[0, 0], box[1, 1], box[2, 2]]).astype(jnp.float32)

        cost = pl.CostEstimate(
            flops=20 * p_pad,
            transcendentals=p_pad,
            bytes_accessed=(8 + 4) * 4 * p_pad,
        )

        out = pl.pallas_call(
            functools.partial(_disp_kernel, periodic=periodic),
            out_shape=jax.ShapeDtypeStruct((4, p_pad), jnp.float32),
            grid=grid,
            in_specs=[
                pl.BlockSpec((8, tile), lambda i: (0, i)),
                pl.BlockSpec(memory_space=pltpu.MemorySpace.SMEM),
            ],
            out_specs=pl.BlockSpec((4, tile), lambda i: (0, i)),
            compiler_params=pltpu.CompilerParams(
                dimension_semantics=("parallel",)),
            cost_estimate=cost,
        )(fused, box_diag)

        # Single fused slice + transpose back to pair-major, then cheap views.
        out_t = out[:, :n_pairs].T        # (n_pairs, 4)
        r_ij = out_t[:, 0:3]              # (n_pairs, 3)
        d_ij = out_t[:, 3:4]              # (n_pairs, 1)
        return r_ij, d_ij


def _reference(coordinate_i, coordinate_j, box_vectors, is_periodic):
    """Pure numpy reference mirroring the PyTorch module (float32)."""
    ci = np.asarray(coordinate_i, np.float32)
    cj = np.asarray(coordinate_j, np.float32)
    r = ci - cj
    if is_periodic:
        box_lengths = np.diag(np.asarray(box_vectors, np.float32))
        r = np.remainder(r + box_lengths / 2.0, box_lengths) - box_lengths / 2.0
    d = np.linalg.norm(r, axis=1).astype(np.float32)[:, None]
    return r.astype(np.float32), d


if __name__ == "__main__":
    key = jax.random.PRNGKey(0)
    n_pairs = 300
    # Non-power-of-two box length to exercise the true-divide PBC wrap.
    box_len = 3.1
    k1, k2 = jax.random.split(key)
    coordinate_i = jax.random.uniform(k1, (n_pairs, 3), jnp.float32, 0.0, box_len)
    coordinate_j = jax.random.uniform(k2, (n_pairs, 3), jnp.float32, 0.0, box_len)
    box_vectors = box_len * jnp.eye(3, dtype=jnp.float32)

    disp = OrthogonalDisplacementFunction()

    # Periodic path.
    r_p, d_p = disp(coordinate_i, coordinate_j, box_vectors, True)
    jax.block_until_ready((r_p, d_p))
    assert r_p.shape == (n_pairs, 3) and d_p.shape == (n_pairs, 1)
    ref_r_p, ref_d_p = _reference(coordinate_i, coordinate_j, box_vectors, True)
    np.testing.assert_allclose(np.asarray(r_p), ref_r_p, rtol=1e-5, atol=1e-5)
    np.testing.assert_allclose(np.asarray(d_p), ref_d_p, rtol=1e-5, atol=1e-5)

    # Non-periodic path.
    r_n, d_n = disp(coordinate_i, coordinate_j, box_vectors, False)
    jax.block_until_ready((r_n, d_n))
    ref_r_n, ref_d_n = _reference(coordinate_i, coordinate_j, box_vectors, False)
    np.testing.assert_allclose(np.asarray(r_n), ref_r_n, rtol=1e-5, atol=1e-5)
    np.testing.assert_allclose(np.asarray(d_n), ref_d_n, rtol=1e-5, atol=1e-5)

    print("KERNEL_OK")
</pallas_src>

<mosaic_0001>
module attributes {stable_mosaic.version = 11 : i64} {
  func.func @_disp_kernel(%arg0: i32, %arg1: memref<8x256xf32, #tpu.memory_space<vmem>>, %arg2: memref<3xf32, #tpu.memory_space<smem>>, %arg3: memref<4x256xf32, #tpu.memory_space<vmem>>) attributes {dimension_semantics = [#tpu.dimension_semantics<parallel>], iteration_bounds = array<i64: 2>, scalar_prefetch = 0 : i64, scratch_operands = 0 : i64, tpu.core_type = #tpu.core_type<tc>, window_params = [{transform_indices = @transform_0, window_bounds = array<i64: 8, 256>}, {transform_indices = @transform_1, window_bounds = array<i64: 3>}, {transform_indices = @transform_2, window_bounds = array<i64: 4, 256>}]} {
    %c0 = arith.constant 0 : index
    %c0_0 = arith.constant 0 : index
    %0 = vector.load %arg1[%c0, %c0_0] : memref<8x256xf32, #tpu.memory_space<vmem>>, vector<3x256xf32>
    %c3 = arith.constant 3 : index
    %c0_1 = arith.constant 0 : index
    %1 = vector.load %arg1[%c3, %c0_1] : memref<8x256xf32, #tpu.memory_space<vmem>>, vector<3x256xf32>
    %2 = arith.subf %0, %1 : vector<3x256xf32>
    %3 = tpu.iota {dimensions = array<i32: 0>} : vector<3x256xi32>
    %c0_i32 = arith.constant 0 : i32
    %4 = vector.broadcast %c0_i32 : i32 to vector<3x256xi32>
    %5 = arith.cmpi eq, %3, %4 : vector<3x256xi32>
    %c0_2 = arith.constant 0 : index
    %6 = memref.load %arg2[%c0_2] : memref<3xf32, #tpu.memory_space<smem>>
    %c1_i32 = arith.constant 1 : i32
    %7 = vector.broadcast %c1_i32 : i32 to vector<3x256xi32>
    %8 = arith.cmpi eq, %3, %7 : vector<3x256xi32>
    %c1 = arith.constant 1 : index
    %9 = memref.load %arg2[%c1] : memref<3xf32, #tpu.memory_space<smem>>
    %c2 = arith.constant 2 : index
    %10 = memref.load %arg2[%c2] : memref<3xf32, #tpu.memory_space<smem>>
    %11 = vector.broadcast %9 : f32 to vector<3x256xf32>
    %12 = vector.broadcast %10 : f32 to vector<3x256xf32>
    %13 = arith.select %8, %11, %12 : vector<3x256xi1>, vector<3x256xf32>
    %14 = vector.broadcast %6 : f32 to vector<3x256xf32>
    %15 = arith.select %5, %14, %13 : vector<3x256xi1>, vector<3x256xf32>
    %cst = arith.constant 5.000000e-01 : f32
    %16 = vector.broadcast %cst : f32 to vector<3x256xf32>
    %17 = arith.mulf %16, %15 : vector<3x256xf32>
    %18 = arith.addf %2, %17 : vector<3x256xf32>
    %19 = arith.divf %18, %15 : vector<3x256xf32>
    %20 = math.floor %19 : vector<3x256xf32>
    %21 = arith.mulf %15, %20 : vector<3x256xf32>
    %22 = arith.subf %2, %21 : vector<3x256xf32>
    %c0_3 = arith.constant 0 : index
    %c0_4 = arith.constant 0 : index
    %23 = vector.load %arg3[%c0_3, %c0_4] : memref<4x256xf32, #tpu.memory_space<vmem>>, vector<3x256xf32>
    tpu.vector_store %arg3[%c0_3, %c0_4], %22 {strides = array<i32>} : memref<4x256xf32, #tpu.memory_space<vmem>>, vector<3x256xf32>,
    %24 = arith.mulf %22, %22 : vector<3x256xf32>
    %25 = vector.extract_strided_slice %24 {offsets = [0, 0], sizes = [1, 256], strides = [1, 1]} : vector<3x256xf32> to vector<1x256xf32>
    %26 = vector.extract_strided_slice %24 {offsets = [1, 0], sizes = [1, 256], strides = [1, 1]} : vector<3x256xf32> to vector<1x256xf32>
    %27 = arith.addf %25, %26 : vector<1x256xf32>
    %28 = vector.extract_strided_slice %24 {offsets = [2, 0], sizes = [1, 256], strides = [1, 1]} : vector<3x256xf32> to vector<1x256xf32>
    %29 = arith.addf %27, %28 : vector<1x256xf32>
    %30 = math.sqrt %29 : vector<1x256xf32>
    %c3_5 = arith.constant 3 : index
    %c0_6 = arith.constant 0 : index
    %31 = vector.load %arg3[%c3_5, %c0_6] : memref<4x256xf32, #tpu.memory_space<vmem>>, vector<1x256xf32>
    tpu.vector_store %arg3[%c3_5, %c0_6], %30 {strides = array<i32>} : memref<4x256xf32, #tpu.memory_space<vmem>>, vector<1x256xf32>,
    return
  }
  func.func @transform_0(%arg0: i32) -> (i32, i32) {
    %c0_i32 = arith.constant 0 : i32
    %c0_i32_0 = arith.constant 0 : i32
    return %c0_i32, %arg0 : i32, i32
  }
  func.func @transform_1(%arg0: i32) -> i32 {
    %c0_i32 = arith.constant 0 : i32
    %c0_i32_0 = arith.constant 0 : i32
    return %c0_i32 : i32
  }
  func.func @transform_2(%arg0: i32) -> (i32, i32) {
    %c0_i32 = arith.constant 0 : i32
    %c0_i32_0 = arith.constant 0 : i32
    return %c0_i32, %arg0 : i32, i32
  }
}

</mosaic_0001>

<bundles_post_ra>
// kernel: tpu_custom_call.1
= control target key start
LH: loop header
LB: loop body
LE: loop exit
PB: predicated region body
PF: predicated region fallthrough
CT: control target
= control target key end

     0   :  { %7 = vsyncpa [#allocation3], 0  ;;  %s794_s0 = inlined_call_operand.hbm [shape: f32[8,512], index: 0, kind: input, shape index: {}]   ;;  %s795_s1 = inlined_call_operand.vmem [shape: f32[3], index: 1, kind: input, shape index: {}]   ;;  %s796_s2 = inlined_call_operand.hbm [shape: f32[4,512], index: 2, kind: output, shape index: {}]  }
   0x1   :  { %9 = vsyncpa [#allocation3 + $0x1], 0 }
   0x2   :  { %10 = vsyncpa [#allocation5], 0 }
   0x3   :  { %11 = vsyncpa [#allocation4], 0 }
   0x4   :  { %13 = vsyncpa [#allocation4 + $0x1], 0  ;;  %s589_s9 = smov 0   ;;  %s591_s10 = smov 0  }
   0x5   :  { %s593_s11 = smov 0   ;;  %s595_s12 = smov 0  }
   0x6 LB: > { %s610_s13 = sadd.s32 4294967295, %s568_s12   ;;  %s368_s14 = sadd.s32 4294967294, %s568_s12   ;;  %s568_s12 = sphi %s595_s12, %s817_s12   ;;  %s564_s11 = sphi %s593_s11, %s816_s11   ;;  %s560_s10 = sphi %s591_s10, %s815_s10   ;;  %s556_s9 = sphi %s589_s9, %s814_s9  }
   0x7   : > { %p39_p0 = scmp.ne.s32.totalorder %s560_s10, %s556_s9  ;;  %p797_p1 = scmp.eq.s32.totalorder %s610_s13, 0 }
   0x8   : > { %p90_p3 = scmp.eq.s32.totalorder %s368_s14, 1  ;;  %p369_p5 = scmp.ge.s32.totalorder %s568_s12, 1 }
   0x9   : > { %p619_p4 = por %p797_p1, %p39_p0  ;;  %p97_p7 = scmp.lt.s32.totalorder %s568_s12, 3 }
   0xa   : > { %p624_p6 = por %p90_p3, %p39_p0  ;;  %s110_s19 = sshll.u32 %s795_s1, 4  ;;  %s111_s19 = int_to_ptr.vmem [resolvable:$true] %s110_s19 }
   0xb   : > { %s800_s15 = scalar_select %p619_p4, 1, 0 }
   0xc   : > { %s801_s16 = scalar_select %p624_p6, 1, 0 }
   0xd   : > { %p632_p8 = pnand %p369_p5, %p97_p7  ;;  %s640_s21 = sadd.s32 1, %s568_s12  }
   0xe   : > { %s23_s23 = ssub.s32 %s568_s12, %s640_s21  ;;  %s26_s25 = sadd.s32 1, %s564_s11 }
   0xf   : > { %p397_p10 = pneg %p632_p8  ;;  %p650_p12 = scmp.eq.s32.totalorder %s23_s23, 0 }
  0x10   : > { %p33_p13 = scmp.ne.s32.totalorder %s564_s11, %s560_s10  ;;  %s453_s26 = scalar_lea.vmem %s111_s19, 16 }
  0x11   : > { %p644_p11 = pnand %p397_p10, %p797_p1  ;;  %p454_p0 = scmp.ne.s32.totalorder %s111_s19, %s453_s26 }
  0x12   : > { %p461_p9 = scmp.lt.s32.totalorder %s111_s19, %s111_s19  ;;  %p462_p2 = scmp.lt.s32.totalorder %s453_s26, %s453_s26 }
  0x13   : > { %p455_p3 = pneg %p644_p11 }
  0x14   : > { %p463_p10 = por %p462_p2, %p461_p9 }
  0x15   : > { %p456_p5 = pnand %p455_p3, %p454_p0 }
  0x17   : > { %p457_p7 = pneg %p456_p5 }
  0x19   : > { %p464_p1 = pnand %p463_p10, %p457_p7 }
  0x1b   : > { %467 = shalt.err (!%p464_p1)
}
  0x1c   : > { %s570_s27 = smov [#allocation6]   ;;  %p34_p2 = scmp.eq.s32.totalorder %s568_s12, 0 }
  0x1d   : > { %400 = dma.vmem_to_smem (!%p644_p11), %s111_s19, 16, %s570_s27, [#allocation5]  }
  0x1e   : > { %s664_s28 = scalar_select %p650_p12, %s564_s11, %s26_s25  }
  0x1f   : > { %p805_p1 = scmp.eq.s32.totalorder %s610_s13, 1  ;;  %p410_p0 = scmp.lt.s32.totalorder %s568_s12, 2 }
  0x20   : > { %s121_s30 = sand.u32 1, %s564_s11   ;;  %p35_p3 = por %p34_p2, %p33_p13 }
  0x21   : > { %p672_p9 = por %p805_p1, %p33_p13  ;;  %s372_s3 = sshll.u32 %s121_s30, 4 }
  0x22   : > { %s387_s4 = sshll.u32 %s568_s12, 8  ;;  %s125_s8 = scalar_lea.vmem [#allocation2], %s372_s3 }
  0x23   : > { %s806_s29 = scalar_select %p672_p9, 1, 0 }
  0x24   : > { %s685_s7 = scalar_lea.hbm %s794_s0, %s387_s4  ;;  %s133_s14 = sshll.u32 %s125_s8, 4  ;;  %s691_s14 = int_to_ptr.vmem [resolvable:$true] %s133_s14 }
  0x25   : > { %p687_p11 = pnand %p410_p0, %p35_p3  ;;  %s122_s18 = scalar_lea.sflag [#allocation3], %s121_s30 }
  0x26   : > { %s468_s19 = scalar_lea.hbm %s685_s7, 256  ;;  %s473_s24 = scalar_lea.hbm %s794_s0, 512 }
  0x27   : > { %p469_p12 = scmp.ne.s32.totalorder %s685_s7, %s468_s19  ;;  %p470_p13 = pneg %p687_p11 }
  0x28   : > { %p474_p10 = scmp.lt.u32.totalorder %s685_s7, %s794_s0  ;;  %p475_p2 = scmp.lt.u32.totalorder %s473_s24, %s468_s19 }
  0x29   : > { %p471_p5 = pnand %p470_p13, %p469_p12  ;;  %p477_p0 = scmp.lt.u32.totalorder %s468_s19, %s685_s7 }
  0x2a   : > { %p476_p1 = por %p475_p2, %p474_p10 }
  0x2b   : > { %p472_p7 = pneg %p471_p5 }
  0x2c   : > { %p478_p3 = por %p477_p0, %p476_p1 }
  0x2e   : > { %p479_p6 = pnand %p478_p3, %p472_p7 }
  0x30   : > { %482 = shalt.err (!%p479_p6)
}
  0x31   : > { %s483_s27 = scalar_lea.vmem %s691_s14, 256  ;;  %s571_s30 = smov [#allocation2]  }
  0x32   : > { %p484_p12 = scmp.ne.s32.totalorder %s691_s14, %s483_s27  ;;  %s488_s3 = sshll.u32 %s571_s30, 4  ;;  %s489_s3 = int_to_ptr.vmem [resolvable:$false] %s488_s3 }
  0x33   : > { %s490_s4 = scalar_lea.vmem %s489_s3, 512  ;;  %p491_p4 = scmp.lt.s32.totalorder %s691_s14, %s489_s3 }
  0x34   : > { %p486_p5 = pnand %p484_p12, %p470_p13  ;;  %p492_p10 = scmp.lt.s32.totalorder %s490_s4, %s483_s27 }
  0x36   : > { %p487_p9 = pneg %p486_p5  ;;  %p493_p2 = por %p492_p10, %p491_p4 }
  0x38   : > { %p494_p1 = pnand %p493_p2, %p487_p9 }
  0x3a   : > { %497 = shalt.err (!%p494_p1)
}
  0x3b   : > { %404 = dma.hbm_to_vmem [thread:$0]  (!%p687_p11), %s685_s7, 256, %s691_s14, %s122_s18  }
  0x3c   : > { %142 = sbr.rel (%p632_p8) target bundleno = 147 (0x93), region = 28  ;;  %s721_s5 = sand.u32 (!%p632_p8), 1, %s560_s10  }
  0x3d   : > { %s376_s6 = sshll.u32 (!%p632_p8), %s721_s5, 4  ;;  %s145_s8 = scalar_lea.sflag (!%p632_p8), [#allocation3], %s721_s5 }
  0x3e   : > { %s148_s19 = scalar_lea.vmem (!%p632_p8), [#allocation2], %s376_s6  ;;  %p808_p4 = scmp.ne.s32.totalorder (!%p632_p8), %s800_s15, 0 }
  0x43   : > { %543 = dma.done.wait (%p808_p4), %s145_s8, 256  }
  0x44   : > { %545 = vsyncadd (%p808_p4), %s145_s8, 4294967040  ;;  %p809_p6 = scmp.eq.s32.totalorder %s610_s13, 0 }
  0x46   : > { %547 = dma.done.wait (%p809_p6), [#allocation5], 16   ;;  %p810_p9 = pmov %p809_p6 }
  0x48   : > { %549 = vsyncadd (%p810_p9), [#allocation5], 4294967280 }
  0x49   : > { %157 = sfence }
  0x4a   : > { %v188_v0 = vlaneseq  ;;  %s191_s20 = sld [smem:[#allocation6]]  ;;  %s379_s7 = sld [smem:[#allocation6 + $0x1]]  ;;  %v178_v2 = vld [vmem:[%s148_s19] sm:$0x38]  ;;  %v179_v3 = vld [vmem:[%s148_s19 + $0x8] sm:$0x38] }
  0x4b   : > { %s380_s14 = sld [smem:[#allocation6 + $0x2]]  ;;  %v182_v8 = vrot.slane %v178_v2, 3  ;;  %v183_v9 = vrot.slane %v179_v3, 3  ;;  %v176_v11 = vld [vmem:[%s148_s19] sm:$0x7]  ;;  %s378_s15 = sshll.u32 %s721_s5, 3 }
  0x4c   : > { %v734_v1 = vshrl.u32 %v188_v0, 7  ;;  %v177_v12 = vld [vmem:[%s148_s19 + $0x8] sm:$0x7]  ;;  %s739_s17 = scalar_lea.vmem [#allocation7], %s378_s15  ;;  %v572_v38 = vmov 1966171168  }
  0x4d   : > { %v186_v13 = vsub.f32 %v176_v11, %v182_v8  ;;  %v187_v14 = vsub.f32 %v177_v12, %v183_v9  ;;  %v251_v39 = vunpack.c.l.s4 %v572_v38  ;;  %s286_s18 = sshll.u32 %s739_s17, 4  ;;  %s388_s22 = sshll.u32 %s610_s13, 7  ;;  %vm267_vm6 = vcmp.lt.s32.totalorder %v188_v0, 256  ;;  %s746_s18 = int_to_ptr.vmem [resolvable:$true] %s286_s18 }
  0x4e   : > { %vm192_vm0 = vcmp.eq.s32.totalorder %v734_v1, 1  ;;  %vm190_vm1 = vcmp.eq.s32.totalorder %v734_v1, 0  ;;  %s751_s25 = scalar_lea.hbm %s796_s2, %s388_s22  ;;  %s272_s26 = scalar_lea.sflag [#allocation4], %s721_s5 }
  0x4f   : > { %v252_v42 = vunpack.c.0.s8 %v251_v39  ;;  %s498_s27 = scalar_lea.vmem %s746_s18, 128  ;;  %p811_p11 = scmp.ne.s32.totalorder %s806_s29, 0 }
  0x50   : > { %v198_v4 = vstv %s191_s20  ;;  %v195_v5 = vstv %s379_s7  ;;  %p499_p8 = scmp.ne.s32.totalorder %s746_s18, %s498_s27  ;;  %s573_s13 = smov [#allocation7]  }
  0x51   : > { %v196_v6 = vstv %s380_s14  ;;  %v255_v50 = vsub.s32 %v252_v42, %v734_v1  ;;  %s502_s30 = sshll.u32 %s573_s13, 4  ;;  %s503_s30 = int_to_ptr.vmem [resolvable:$false] %s502_s30 }
  0x52   : > { %v197_v7 = vsel %vm192_vm0, %v195_v5, %v196_v6  ;;  %p500_p13 = pnand %p499_p8, %p811_p11  ;;  %s504_s3 = scalar_lea.vmem %s503_s30, 256 }
  0x53   : > { %v199_v10 = vsel %vm190_vm1, %v198_v4, %v197_v7  ;;  %p505_p0 = scmp.lt.s32.totalorder %s746_s18, %s503_s30  ;;  %p506_p3 = scmp.lt.s32.totalorder %s504_s3, %s498_s27 }
  0x54   : > { %447 = vrcp.f32 %v199_v10  ;;  %v200_v15 = vmul.f32 0.5, %v199_v10  ;;  %p501_p7 = pneg %p500_p13 }
  0x55   : > { %p507_p12 = por %p506_p3, %p505_p0 }
  0x56   : > { %v201_v16 = vadd.f32 %v200_v15, %v186_v13  ;;  %v202_v17 = vadd.f32 %v200_v15, %v187_v14 }
  0x57   : > { %p508_p5 = pnand %p507_p12, %p501_p7 }
  0x5e   : > { %v448_v18 = vpop.eup %447 }
  0x5f   : > { %v204_v19 = vmul.f32 %v448_v18, %v201_v16  ;;  %v205_v20 = vmul.f32 %v448_v18, %v202_v17 }
  0x61   : > { %v206_v21 = vfloor.f32 %v204_v19  ;;  %v207_v22 = vfloor.f32 %v205_v20 }
  0x63   : > { %v208_v23 = vmul.f32 %v206_v21, %v199_v10  ;;  %v209_v24 = vmul.f32 %v207_v22, %v199_v10 }
  0x65   : > { %v210_v25 = vsub.f32 %v186_v13, %v208_v23  ;;  %v211_v26 = vsub.f32 %v187_v14, %v209_v24 }
  0x67   : > { %v214_v27 = vcombine.low %v210_v25, %v211_v26  ;;  %v217_v28 = vmul.f32 %v210_v25, %v210_v25  ;;  %v218_v29 = vmul.f32 %v211_v26, %v211_v26 }
  0x69   : > { %216 = vst [vmem:[%s739_s17] sm:$0x77] %v214_v27  ;;  %v221_v30 = vrot.slane %v217_v28, 1  ;;  %v222_v31 = vrot.slane %v218_v29, 1  ;;  %v227_v32 = vrot.slane %v217_v28, 2  ;;  %v228_v33 = vrot.slane %v218_v29, 2 }
  0x6b   : > { %v225_v34 = vadd.f32 %v221_v30, %v217_v28  ;;  %v226_v35 = vadd.f32 %v222_v31, %v218_v29 }
  0x6d   : > { %v231_v36 = vadd.f32 %v227_v32, %v225_v34  ;;  %v232_v37 = vadd.f32 %v228_v33, %v226_v35 }
  0x6f   : > { %449 = vrsqrt.f32 %v231_v36  ;;  %vm235_vm2 = vcmp.eq.f32.partialorder %v231_v36, inf  ;;  %v238_v41 = vand.u32 2147483648, %v231_v36  ;;  %vm237_vm3 = vcmp.eq.f32.partialorder %v231_v36, 0.0 }
  0x70   : > { %451 = vrsqrt.f32 %v232_v37  ;;  %vm242_vm4 = vcmp.eq.f32.partialorder %v232_v37, inf  ;;  %v245_v45 = vand.u32 2147483648, %v232_v37  ;;  %vm244_vm5 = vcmp.eq.f32.partialorder %v232_v37, 0.0 }
  0x79   : > { %v450_v40 = vpop.eup %449 }
  0x7a   : > { %v452_v43 = vpop.eup %451  ;;  %v234_v44 = vmul.f32 %v450_v40, %v231_v36 }
  0x7b   : > { %v241_v46 = vmul.f32 %v452_v43, %v232_v37 }
  0x7c   : > { %v236_v47 = vsel %vm235_vm2, %v231_v36, %v234_v44 }
  0x7d   : > { %v239_v48 = vsel %vm237_vm3, %v238_v41, %v236_v47  ;;  %v243_v49 = vsel %vm242_vm4, %v232_v37, %v241_v46 }
  0x7e   : > { %v246_v51 = vsel %vm244_vm5, %v245_v45, %v243_v49 }
  0x7f   : > { %v249_v52 = vcombine.low %v239_v48, %v246_v51 }
  0x81   : > { %v256_v53 = vrot.slane %v249_v52, %v255_v50 }
  0x83   : > { %v263_v54 = vrot.slane %v256_v53, %v255_v50 }
  0x85   : > { %381 = vst.msk [vmem:[%s739_s17 + $0x3] ss:$4 sm:$0x3] %vm267_vm6, %v263_v54 }
  0x86   : > { %511 = shalt.err (!%p508_p5)
}
  0x87   : > { %s512_s4 = scalar_lea.hbm %s751_s25, 128  ;;  %s516_s8 = scalar_lea.hbm %s796_s2, 256 }
  0x88   : > { %p513_p10 = scmp.ne.s32.totalorder %s751_s25, %s512_s4  ;;  %p517_p4 = scmp.lt.u32.totalorder %s751_s25, %s796_s2 }
  0x89   : > { %p518_p6 = scmp.lt.u32.totalorder %s516_s8, %s512_s4  ;;  %p520_p8 = scmp.lt.u32.totalorder %s512_s4, %s751_s25 }
  0x8a   : > { %p514_p2 = pnand %p513_p10, %p811_p11 }
  0x8b   : > { %p519_p9 = por %p518_p6, %p517_p4 }
  0x8c   : > { %p515_p1 = pneg %p514_p2 }
  0x8d   : > { %p521_p13 = por %p520_p8, %p519_p9 }
  0x8f   : > { %p522_p7 = pnand %p521_p13, %p515_p1 }
  0x91   : > { %525 = shalt.err (!%p522_p7)
}
  0x92   : > { %395 = dma.vmem_to_hbm [thread:$0]  (%p811_p11), %s746_s18, 128, %s751_s25, %s272_s26  }
  0x93 PF: > { %s298_s7 = sand.u32 1, %s556_s9   ;;  %p812_p0 = scmp.ne.s32.totalorder %s801_s16, 0 }
  0x94   : > { %p813_p3 = scmp.ge.s32.totalorder %s568_s12, 2  ;;  %s299_s14 = scalar_lea.sflag [#allocation4], %s298_s7 }
  0x96   : > { %p406_p12 = pnand %p813_p3, %p812_p0 }
  0x98   : > { %551 = dma.done.wait (!%p406_p12), %s299_s14, 128  }
  0x99   : > { %553 = vsyncadd (!%p406_p12), %s299_s14, 4294967168  ;;  %p16_p5 = scmp.ge.s32.totalorder %s640_s21, 4   ;;  %s814_s9 = smov %s560_s10 }
  0x9a   : > { %s815_s10 = smov %s564_s11  ;;  %s816_s11 = smov %s664_s28 }
  0x9b   : > { %s817_s12 = smov %s640_s21  ;;  %18 = sbr.rel (!%p16_p5) target bundleno = 6 (0x6), region = 79 }
  0xa2   :  { %304 = vsyncpa [#allocation3], 1 }
  0xa3   :  { %306 = vsyncpa [#allocation3 + $0x1], 1 }
  0xa4   :  { %307 = vsyncpa [#allocation4], 1 }
  0xa5   :  { %309 = vsyncpa [#allocation4 + $0x1], 1 }
  0xa6   :  { %310 = vsyncpa [#allocation5], 1 }
  0xa7   :  { %312 = vsyncpa [#allocation5 + $0x1], 1 }

</bundles_post_ra>
